<compile_context>
chip_gen: v6e
topology: v6e:2x2x1
jax: 0.10.0
libtpu: 0.0.40
codegen_flags: <defaults>
</compile_context>

<pallas_src>
import jax
import jax.numpy as jnp
from jax.experimental import pallas as pl
from jax.experimental.pallas import tpu as pltpu


def _mask_kernel(x_ref, w1_ref, w2_ref, o_ref):
    # x_ref : (b, C, t)      b images' (channels, spatial-tile) slabs
    # w1_ref: (hidden, C)    conv1 weight (1x1 dims squeezed)
    # w2_ref: (C, hidden)    conv2 weight
    w1 = w1_ref[...]
    w2 = w2_ref[...]
    for i in range(x_ref.shape[0]):                       # static unroll over batch-in-block
        x = x_ref[i]                                       # (C, t)
        h = jnp.dot(w1, x, preferred_element_type=jnp.float32)   # (hidden, t)
        h = jnp.maximum(h, 0.0).astype(w2.dtype)                 # ReLU, back to weight dtype
        y = jnp.dot(w2, h, preferred_element_type=jnp.float32)   # (C, t)
        o_ref[i] = jax.nn.sigmoid(y).astype(o_ref.dtype)         # Sigmoid, cast at store


def mask_forward(x_nchw, w1, w2, *, vmem_block_budget=16 << 20,
                 target_block_bytes=2 << 20, t_override=None):
    """x_nchw: (N, C, H, W); w1: (C//r, C); w2: (C, C//r). Returns the mask (N, C, H, W).

    Matmuls accumulate in f32; ReLU/sigmoid in f32; single cast at the store.
    """
    N, C, H, W = x_nchw.shape
    hidden = w1.shape[0]
    HW = H * W
    bytes_x = jnp.dtype(x_nchw.dtype).itemsize
    bytes_w = jnp.dtype(w1.dtype).itemsize

    x_flat = x_nchw.reshape(N, C, HW)

    # VMEM bytes needed per spatial column of a tile:
    #   double-buffered in block (2*C*bytes) + double-buffered out block (2*C*bytes)
    #   + f32 intermediates y (C*4) and h (hidden*4), single-buffered.
    per_col = 4 * C * bytes_x + 4 * (C + hidden)
    cols_cap = max(128, vmem_block_budget // per_col)
    t_cap = (cols_cap // 128) * 128
    if t_override is not None:
        assert t_override % 128 == 0, "t_override must be a multiple of 128"
        t_cap = t_override

    if HW > t_cap:
        # Path A: tile the spatial axis, one image per step. Ragged last block:
        # OOB spatial columns never mix into valid ones (contraction is over C)
        # and OOB output lanes are masked on write -> no pad/slice round-trips.
        b = 1
        t = t_cap
        grid = (N, pl.cdiv(HW, t))
    else:
        # Path B: whole image fits in one tile -> batch several images per step.
        per_image = max(1, C * HW * bytes_x)
        b = max(1, min(target_block_bytes // per_image, N))
        b = min(b, max(1, cols_cap // max(HW, 1)))          # respect the VMEM budget
        if N >= 2:
            b = min(b, pl.cdiv(N, 2))                        # keep >= 2 steps for v7x's 2 TCs
        b = max(1, b)
        t = HW
        grid = (pl.cdiv(N, b), 1)

    # Explicit VMEM limit derived from the actual footprint (plus margin),
    # capped below v7x's 64 MiB physical per-TC VMEM.
    block_bytes = b * C * t * bytes_x
    interm_bytes = b * t * 4 * (C + hidden)
    w_bytes = 2 * hidden * C * bytes_w
    vmem_limit = 4 * block_bytes + interm_bytes + 2 * w_bytes + (4 << 20)
    vmem_limit = int(min(max(vmem_limit, 8 << 20), 48 << 20))

    out_flat = pl.pallas_call(
        _mask_kernel,
        out_shape=jax.ShapeDtypeStruct((N, C, HW), x_nchw.dtype),
        grid_spec=pltpu.PrefetchScalarGridSpec(
            num_scalar_prefetch=0,
            grid=grid,
            in_specs=[
                pl.BlockSpec((b, C, t), lambda n, j: (n, 0, j)),
                pl.BlockSpec((hidden, C), lambda n, j: (0, 0)),
                pl.BlockSpec((C, hidden), lambda n, j: (0, 0)),
            ],
            out_specs=pl.BlockSpec((b, C, t), lambda n, j: (n, 0, j)),
        ),
        compiler_params=pltpu.CompilerParams(
            # Both grid axes are independent -> megacore sharding on v7x.
            dimension_semantics=("parallel", "parallel"),
            vmem_limit_bytes=vmem_limit,
        ),
    )(x_flat, w1, w2)

    return out_flat.reshape(N, C, H, W)


def _reference(x_nchw, w1, w2):
    # pure-JAX reference of the same math (1x1 convs as channel matmuls)
    N, C, H, W = x_nchw.shape
    xf = x_nchw.reshape(N, C, H * W)
    h = jnp.maximum(jnp.einsum("oc,ncs->nos", w1, xf), 0.0)
    y = jnp.einsum("co,nos->ncs", w2, h)
    return jax.nn.sigmoid(y).reshape(N, C, H, W)


if __name__ == "__main__":
    # Small shapes consistent with the module: dim=64, r=16 -> hidden=4
    N, C, H, W = 2, 64, 8, 8
    r = 16
    hidden = C // r

    key = jax.random.PRNGKey(0)
    kx, k1, k2, kx2 = jax.random.split(key, 4)

    x = jax.random.normal(kx, (N, C, H, W), dtype=jnp.float32)
    # Synthetic conv weights (kernel_size=1, bias=False), 1x1 dims squeezed:
    #   conv1.weight: (hidden, C, 1, 1) -> (hidden, C)
    #   conv2.weight: (C, hidden, 1, 1) -> (C, hidden)
    w1 = jax.random.normal(k1, (hidden, C), dtype=jnp.float32) * (1.0 / jnp.sqrt(C))
    w2 = jax.random.normal(k2, (C, hidden), dtype=jnp.float32) * (1.0 / jnp.sqrt(hidden))

    # Path B (small HW, batched images per step).
    out = jax.block_until_ready(mask_forward(x, w1, w2))
    ref = _reference(x, w1, w2)
    assert out.shape == (N, C, H, W)
    assert jnp.allclose(out, ref, atol=1e-5, rtol=1e-5)

    # Path A (spatial tiling with a ragged last block), forced via t_override.
    x2 = jax.random.normal(kx2, (N, C, 20, 20), dtype=jnp.float32)
    out2 = jax.block_until_ready(mask_forward(x2, w1, w2, t_override=128))
    ref2 = _reference(x2, w1, w2)
    assert out2.shape == x2.shape
    assert jnp.allclose(out2, ref2, atol=1e-5, rtol=1e-5)

    print("KERNEL_OK")
</pallas_src>

<mosaic_0001>
module attributes {stable_mosaic.version = 11 : i64} {
  func.func @_mask_kernel(%arg0: i32, %arg1: i32, %arg2: memref<1x64x64xf32, #tpu.memory_space<vmem>>, %arg3: memref<4x64xf32, #tpu.memory_space<vmem>>, %arg4: memref<64x4xf32, #tpu.memory_space<vmem>>, %arg5: memref<1x64x64xf32, #tpu.memory_space<vmem>>) attributes {dimension_semantics = [#tpu.dimension_semantics<parallel>, #tpu.dimension_semantics<parallel>], iteration_bounds = array<i64: 2, 1>, scalar_prefetch = 0 : i64, scratch_operands = 0 : i64, tpu.core_type = #tpu.core_type<tc>, window_params = [{transform_indices = @transform_0, window_bounds = array<i64: 1, 64, 64>}, {pipeline_mode = #tpu.pipeline_mode<synchronous>, transform_indices = @transform_1, window_bounds = array<i64: 4, 64>}, {pipeline_mode = #tpu.pipeline_mode<synchronous>, transform_indices = @transform_2, window_bounds = array<i64: 64, 4>}, {transform_indices = @transform_3, window_bounds = array<i64: 1, 64, 64>}]} {
    %c0 = arith.constant 0 : index
    %c0_0 = arith.constant 0 : index
    %0 = vector.load %arg3[%c0, %c0_0] : memref<4x64xf32, #tpu.memory_space<vmem>>, vector<4x64xf32>
    %c0_1 = arith.constant 0 : index
    %c0_2 = arith.constant 0 : index
    %1 = vector.load %arg4[%c0_1, %c0_2] : memref<64x4xf32, #tpu.memory_space<vmem>>, vector<64x4xf32>
    %c0_3 = arith.constant 0 : index
    %c0_4 = arith.constant 0 : index
    %c0_5 = arith.constant 0 : index
    %2 = vector.load %arg2[%c0_3, %c0_4, %c0_5] : memref<1x64x64xf32, #tpu.memory_space<vmem>>, vector<1x64x64xf32>
    %3 = vector.shape_cast %2 : vector<1x64x64xf32> to vector<64x64xf32>
    %cst = arith.constant dense<0.000000e+00> : vector<4x64xf32>
    %4 = tpu.matmul %0, %3, %cst {dimension_numbers = #tpu.dot_dimension_numbers<[1], [0], [0], [1], [0, 0, 1, 1], [], []>} : vector<4x64xf32>, vector<64x64xf32>, vector<4x64xf32> -> vector<4x64xf32>
    %cst_6 = arith.constant 0.000000e+00 : f32
    %5 = vector.broadcast %cst_6 : f32 to vector<4x64xf32>
    %6 = arith.maximumf %4, %5 : vector<4x64xf32>
    %cst_7 = arith.constant dense<0.000000e+00> : vector<64x64xf32>
    %7 = tpu.matmul %1, %6, %cst_7 {dimension_numbers = #tpu.dot_dimension_numbers<[1], [0], [0], [1], [0, 0, 1, 1], [], []>} : vector<64x4xf32>, vector<4x64xf32>, vector<64x64xf32> -> vector<64x64xf32>
    %8 = arith.negf %7 : vector<64x64xf32>
    %9 = math.exp %8 : vector<64x64xf32>
    %cst_8 = arith.constant 1.000000e+00 : f32
    %10 = vector.broadcast %cst_8 : f32 to vector<64x64xf32>
    %11 = arith.addf %10, %9 : vector<64x64xf32>
    %12 = arith.divf %10, %11 : vector<64x64xf32>
    %c0_9 = arith.constant 0 : index
    %c0_10 = arith.constant 0 : index
    %c0_11 = arith.constant 0 : index
    %13 = vector.load %arg5[%c0_9, %c0_10, %c0_11] : memref<1x64x64xf32, #tpu.memory_space<vmem>>, vector<1x64x64xf32>
    %14 = vector.shape_cast %13 : vector<1x64x64xf32> to vector<64x64xf32>
    %15 = vector.shape_cast %12 : vector<64x64xf32> to vector<1x64x64xf32>
    tpu.vector_store %arg5[%c0_9, %c0_10, %c0_11], %15 {strides = array<i32>} : memref<1x64x64xf32, #tpu.memory_space<vmem>>, vector<1x64x64xf32>,
    return
  }
  func.func @transform_0(%arg0: i32, %arg1: i32) -> (i32, i32, i32) {
    %c0_i32 = arith.constant 0 : i32
    %c0_i32_0 = arith.constant 0 : i32
    return %arg0, %c0_i32, %arg1 : i32, i32, i32
  }
  func.func @transform_1(%arg0: i32, %arg1: i32) -> (i32, i32) {
    %c0_i32 = arith.constant 0 : i32
    %c0_i32_0 = arith.constant 0 : i32
    %c0_i32_1 = arith.constant 0 : i32
    return %c0_i32, %c0_i32_0 : i32, i32
  }
  func.func @transform_2(%arg0: i32, %arg1: i32) -> (i32, i32) {
    %c0_i32 = arith.constant 0 : i32
    %c0_i32_0 = arith.constant 0 : i32
    %c0_i32_1 = arith.constant 0 : i32
    return %c0_i32, %c0_i32_0 : i32, i32
  }
  func.func @transform_3(%arg0: i32, %arg1: i32) -> (i32, i32, i32) {
    %c0_i32 = arith.constant 0 : i32
    %c0_i32_0 = arith.constant 0 : i32
    return %arg0, %c0_i32, %arg1 : i32, i32, i32
  }
}

</mosaic_0001>

<bundles_post_ra>
// kernel: tpu_custom_call.1
= control target key start
LH: loop header
LB: loop body
LE: loop exit
PB: predicated region body
PF: predicated region fallthrough
CT: control target
= control target key end

     0   :  { %8 = vsyncpa [#allocation3], 0  ;;  %s1106_s0 = inlined_call_operand.hbm [shape: f32[2,64,64], index: 0, kind: input, shape index: {}]   ;;  %s1107_s1 = inlined_call_operand.vmem [shape: f32[4,64], index: 1, kind: input, shape index: {}]   ;;  %s1108_s2 = inlined_call_operand.vmem [shape: f32[64,4], index: 2, kind: input, shape index: {}]   ;;  %s1109_s3 = inlined_call_operand.hbm [shape: f32[2,64,64], index: 3, kind: output, shape index: {}]  }
   0x1   :  { %10 = vsyncpa [#allocation3 + $0x1], 0 }
   0x2   :  { %11 = vsyncpa [#allocation4], 0 }
   0x3   :  { %13 = vsyncpa [#allocation4 + $0x1], 0  ;;  %s912_s12 = smov 0   ;;  %s914_s13 = smov 0  }
   0x4   :  { %s916_s14 = smov 0   ;;  %s918_s15 = smov 0  }
   0x5   :  { %s920_s16 = smov 0   ;;  %s922_s17 = smov 0  }
   0x6 LB: > { %s588_s18 = sadd.s32 4294967295, %s882_s17   ;;  %s589_s19 = sadd.s32 4294967294, %s882_s17   ;;  %s882_s17 = sphi %s922_s17, %s19_s17   ;;  %s878_s16 = sphi %s920_s16, %s1120_s16   ;;  %s874_s15 = sphi %s918_s15, %s1119_s15   ;;  %s870_s14 = sphi %s916_s14, %s1118_s14   ;;  %s866_s13 = sphi %s914_s13, %s1117_s13   ;;  %s862_s12 = sphi %s912_s12, %s1116_s12  }
   0x7   : > { %s31_s20 = sadd.s32 1, %s878_s16  ;;  %s40_s21 = sadd.s32 1, %s870_s14 }
   0x8   : > { %p33_p0 = scmp.ge.s32.totalorder %s31_s20, 2  ;;  %p47_p1 = scmp.ne.s32.totalorder %s870_s14, %s866_s13 }
   0x9   : > { %p48_p2 = scmp.eq.s32.totalorder %s882_s17, 0  ;;  %p53_p3 = scmp.ne.s32.totalorder %s866_s13, %s862_s12 }
   0xa   : > { %s1122_s20 = smov (%p33_p0, %s31_s20), 0  ;;  %p54_p5 = scmp.eq.s32.totalorder %s588_s18, 0 }
   0xb   : > { %p953_p4 = por %p48_p2, %p47_p1  ;;  %s35_s23 = ssub.s32 %s878_s16, %s1122_s20 }
   0xc   : > { %p121_p6 = scmp.eq.s32.totalorder %s588_s18, 1  ;;  %p38_p7 = scmp.eq.s32.totalorder %s35_s23, 0 }
   0xd   : > { %p959_p8 = por %p54_p5, %p53_p3  ;;  %p127_p10 = scmp.eq.s32.totalorder %s589_s19, 1 }
   0xe   : > { %p963_p9 = por %p121_p6, %p47_p1  ;;  %p686_p13 = scmp.lt.s32.totalorder %s882_s17, 2 }
   0xf   : > { %s968_s26 = scalar_select %p38_p7, %s870_s14, %s40_s21  }
  0x10   : > { %p970_p11 = por %p127_p10, %p53_p3  ;;  %s153_s28 = sand.u32 1, %s870_s14  }
  0x11   : > { %s592_s29 = sshll.u32 %s153_s28, 6  ;;  %s621_s30 = sshll.u32 %s878_s16, 10 }
  0x12   : > { %s164_s6 = scalar_lea.hbm %s1106_s0, %s621_s30  ;;  %s157_s7 = scalar_lea.vmem [#allocation2], %s592_s29 }
  0x13   : > { %s165_s8 = sshll.u32 %s157_s7, 4  ;;  %p983_p0 = pnand %p686_p13, %p953_p4  ;;  %s166_s8 = int_to_ptr.vmem [resolvable:$true] %s165_s8 }
  0x14   : > { %p595_p1 = scmp.ge.s32.totalorder %s882_s17, 1  ;;  %s154_s10 = scalar_lea.sflag [#allocation3], %s153_s28 }
  0x15   : > { %p776_p2 = pneg %p983_p0  ;;  %s787_s11 = scalar_lea.vmem %s166_s8, 1024 }
  0x16   : > { %p788_p3 = scmp.ne.s32.totalorder %s166_s8, %s787_s11  ;;  %s884_s18 = smov [#allocation2]  }
  0x17   : > { %s792_s19 = sshll.u32 %s884_s18, 4  ;;  %s793_s19 = int_to_ptr.vmem [resolvable:$false] %s792_s19 }
  0x18   : > { %p790_p5 = pnand %p788_p3, %p776_p2  ;;  %s794_s21 = scalar_lea.vmem %s793_s19, 2048 }
  0x19   : > { %p795_p7 = scmp.lt.s32.totalorder %s166_s8, %s793_s19  ;;  %p796_p10 = scmp.lt.s32.totalorder %s794_s21, %s787_s11 }
  0x1a   : > { %p791_p6 = pneg %p790_p5 }
  0x1b   : > { %p797_p12 = por %p796_p10, %p795_p7 }
  0x1d   : > { %p798_p4 = pnand %p797_p12, %p791_p6 }
  0x1f   : > { %801 = shalt.err (!%p798_p4)
}
  0x20   : > { %s885_s22 = smov 128   ;;  %s886_s23 = smov 8  }
  0x21   : > { %681 = dma.hbm_to_vmem [thread:$0]  (!%p983_p0), %s164_s6, 1024, %s166_s8, %s154_s10, %s885_s22, %s885_s22, %s886_s23  }
  0x22   : > { %p173_p13 = scmp.lt.s32.totalorder %s882_s17, 3 }
  0x24   : > { %p174_p2 = pnand %p595_p1, %p173_p13 }
  0x25   : > { %s996_s28 = sand.u32 (!%p174_p2), 1, %s866_s13  }
  0x26   : > { %177 = sbr.rel (%p174_p2) target bundleno = 511 (0x1ff), region = 32  ;;  %s596_s29 = sshll.u32 (!%p174_p2), %s996_s28, 6 }
  0x27   : > { %s180_s30 = scalar_lea.sflag (!%p174_p2), [#allocation3], %s996_s28  ;;  %s183_s4 = scalar_lea.vmem (!%p174_p2), [#allocation2], %s596_s29 }
  0x2b   : > { %853 = dma.done.wait (%p959_p8), %s180_s30, 1024  }
  0x2c   : > { %855 = vsyncadd (%p959_p8), %s180_s30, 4294966272  ;;  %v887_v0 = vmov 0.0   ;;  %vm888_vm0 = vmmov 0   ;;  %v222_v1 = vld [vmem:[%s183_s4 + $0x38] sm:$0xff]  ;;  %v221_v2 = vld [vmem:[%s183_s4 + $0x30] sm:$0xff]  ;;  %vm223_vm1 = vcmask 523264  }
  0x2d   : > { %641 = vmatprep.subr.mxu0 %v887_v0  ;;  %657 = vmatprep.mubr.msk.f32.mxu0 %vm888_vm0, %v887_v0  ;;  %v220_v3 = vld [vmem:[%s183_s4 + $0x28] sm:$0xff]  ;;  %v219_v4 = vld [vmem:[%s183_s4 + $0x20] sm:$0xff]  ;;  %v218_v5 = vld [vmem:[%s183_s4 + $0x18] sm:$0xff]  ;;  %vm298_vm2 = vcmask 31744   ;;  %vm323_vm3 = vcmask 1043456   ;;  %s205_s7 = scalar_lea.vmem [#allocation5], %s596_s29 }
  0x2e   : > { %642 = vmatpush3.msra.mxu0 %v222_v1  ;;  %v217_v6 = vld [vmem:[%s183_s4 + $0x10] sm:$0xff]  ;;  %v216_v7 = vld [vmem:[%s183_s4 + $0x8] sm:$0xff]  ;;  %v215_v8 = vld [vmem:[%s183_s4] sm:$0xff]  ;;  %s622_s8 = sshll.u32 %s874_s15, 10  ;;  %s503_s9 = sshll.u32 %s205_s7, 4  ;;  %s1056_s9 = int_to_ptr.vmem [resolvable:$true] %s503_s9 }
  0x2f   : > { %643 = vmatprep.subr.mxu0 %v887_v0  ;;  %v206_v9 = vld [vmem:[%s1107_s1] sm:$0xf]  ;;  %v208_v14 = vld [vmem:[%s1108_s2 + $0x8] sm:$0xff]  ;;  %v209_v15 = vld [vmem:[%s1108_s2 + $0x10] sm:$0xff]  ;;  %s1054_s11 = scalar_lea.hbm %s1109_s3, %s622_s8  ;;  %s489_s15 = scalar_lea.sflag [#allocation4], %s996_s28 }
  0x30   : > { %644 = vmatpush3.msra.mxu0 %v221_v2  ;;  %v207_v10 = vld [vmem:[%s1108_s2] sm:$0xff]  ;;  %v210_v16 = vld [vmem:[%s1108_s2 + $0x18] sm:$0xff]  ;;  %v212_v18 = vld [vmem:[%s1108_s2 + $0x28] sm:$0xff]  ;;  %s802_s18 = scalar_lea.vmem %s1056_s9, 1024  ;;  %s889_s19 = smov [#allocation5]  }
  0x31   : > { %645 = vmatprep.subr.mxu0 %v887_v0  ;;  %662 = vmatprep.mubr.msk.f32.mxu1 %vm298_vm2, %v207_v10  ;;  %v211_v17 = vld [vmem:[%s1108_s2 + $0x20] sm:$0xff]  ;;  %v213_v19 = vld [vmem:[%s1108_s2 + $0x30] sm:$0xff]  ;;  %v214_v20 = vld [vmem:[%s1108_s2 + $0x38] sm:$0xff]  ;;  %p803_p8 = scmp.ne.s32.totalorder %s1056_s9, %s802_s18  ;;  %s806_s21 = sshll.u32 %s889_s19, 4  ;;  %s807_s21 = int_to_ptr.vmem [resolvable:$false] %s806_s21 }
  0x32   : > { %646 = vmatpush3.msra.mxu0 %v220_v3  ;;  %s808_s22 = scalar_lea.vmem %s807_s21, 2048  ;;  %p809_p1 = scmp.lt.s32.totalorder %s1056_s9, %s807_s21 }
  0x33   : > { %647 = vmatprep.subr.mxu0 %v887_v0  ;;  %p804_p12 = pnand %p803_p8, %p963_p9  ;;  %p810_p3 = scmp.lt.s32.totalorder %s808_s22, %s802_s18 }
  0x34   : > { %648 = vmatpush3.msra.mxu0 %v219_v4 }
  0x35   : > { %649 = vmatprep.subr.mxu0 %v887_v0  ;;  %p805_p0 = pneg %p804_p12  ;;  %p811_p5 = por %p810_p3, %p809_p1 }
  0x36   : > { %650 = vmatpush3.msra.mxu0 %v218_v5 }
  0x37   : > { %651 = vmatprep.subr.mxu0 %v887_v0  ;;  %p812_p6 = pnand %p811_p5, %p805_p0 }
  0x38   : > { %652 = vmatpush3.msra.mxu0 %v217_v6 }
  0x39   : > { %653 = vmatprep.subr.mxu0 %v887_v0 }
  0x3a   : > { %654 = vmatpush3.msra.mxu0 %v216_v7 }
  0x3b   : > { %655 = vmatprep.subr.mxu0 %v887_v0 }
  0x3c   : > { %656 = vmatpush3.msra.mxu0 %v215_v8 }
  0x3d   : > { %658 = vmatmul.mubr.msk.f32.vlgmr.msra.gmra.mxu0 %vm223_vm1, %v206_v9 }
  0xfd   : > { %v293_v11 = vpop.f32.mrf.mxu0 }
  0xfe   : > { %v297_v12 = vmax.f32 %v293_v11, 0.0 }
  0xff   : > { %v659_v13 = vpop.f32.mrf.mxu0 }
 0x100   : > { %660 = vmatprep.subr.msk.mxu1 %vm323_vm3, %v297_v12 }
 0x101   : > { %661 = vmatpush3.msk.msra.mxu1 %vm323_vm3, %v297_v12 }
 0x102   : > { %663 = vmatmul.mubr.msk.f32.vlgmr.msra.gmra.mxu1 %vm298_vm2, %v208_v14 }
 0x103   : > { %665 = vmatprep.mubr.msk.f32.mxu1 %vm298_vm2, %v209_v15 }
 0x106   : > { %666 = vmatmul.mubr.msk.f32.gmra.mxu1 %vm298_vm2, %v210_v16 }
 0x107   : > { %668 = vmatprep.mubr.msk.f32.mxu1 %vm298_vm2, %v211_v17 }
 0x10a   : > { %669 = vmatmul.mubr.msk.f32.gmra.mxu1 %vm298_vm2, %v212_v18 }
 0x10b   : > { %671 = vmatprep.mubr.msk.f32.mxu1 %vm298_vm2, %v213_v19 }
 0x10e   : > { %672 = vmatmul.mubr.msk.f32.gmra.mxu1 %vm298_vm2, %v214_v20 }
 0x1c2   : > { %v664_v21 = vpop.f32.mrf.mxu1 }
 0x1c3   : > { %v609_v22 = vmul.f32 -1.442695, %v664_v21 }
 0x1c4   : > { %v393_v23 = vpop.f32.mrf.mxu1 }
 0x1c5   : > { %742 = vpow2.f32 %v609_v22  ;;  %v608_v24 = vmul.f32 -1.442695, %v393_v23 }
 0x1c6   : > { %v667_v25 = vpop.f32.mrf.mxu1 }
 0x1c7   : > { %744 = vpow2.f32 %v608_v24  ;;  %v611_v26 = vmul.f32 -1.442695, %v667_v25 }
 0x1c8   : > { %v403_v27 = vpop.f32.mrf.mxu1 }
 0x1c9   : > { %746 = vpow2.f32 %v611_v26  ;;  %v610_v28 = vmul.f32 -1.442695, %v403_v27 }
 0x1ca   : > { %v670_v29 = vpop.f32.mrf.mxu1 }
 0x1cb   : > { %748 = vpow2.f32 %v610_v28  ;;  %v613_v30 = vmul.f32 -1.442695, %v670_v29 }
 0x1cc   : > { %v413_v31 = vpop.f32.mrf.mxu1 }
 0x1cd   : > { %750 = vpow2.f32 %v613_v30  ;;  %v612_v32 = vmul.f32 -1.442695, %v413_v31 }
 0x1ce   : > { %v673_v33 = vpop.f32.mrf.mxu1 }
 0x1cf   : > { %752 = vpow2.f32 %v612_v32  ;;  %v615_v34 = vmul.f32 -1.442695, %v673_v33 }
 0x1d0   : > { %v423_v35 = vpop.f32.mrf.mxu1 }
 0x1d1   : > { %754 = vpow2.f32 %v615_v34  ;;  %v614_v36 = vmul.f32 -1.442695, %v423_v35 }
 0x1d2   : > { %v743_v37 = vpop.eup %742 }
 0x1d3   : > { %v457_v38 = vadd.f32 1.0, %v743_v37  ;;  %756 = vpow2.f32 %v614_v36 }
 0x1d4   : > { %v745_v39 = vpop.eup %744 }
 0x1d5   : > { %758 = vrcp.f32 %v457_v38  ;;  %v456_v40 = vadd.f32 1.0, %v745_v39 }
 0x1d6   : > { %v747_v41 = vpop.eup %746 }
 0x1d7   : > { %760 = vrcp.f32 %v456_v40  ;;  %v459_v42 = vadd.f32 1.0, %v747_v41 }
 0x1d8   : > { %v749_v43 = vpop.eup %748 }
 0x1d9   : > { %762 = vrcp.f32 %v459_v42  ;;  %v458_v44 = vadd.f32 1.0, %v749_v43 }
 0x1da   : > { %v751_v45 = vpop.eup %750 }
 0x1db   : > { %764 = vrcp.f32 %v458_v44  ;;  %v461_v46 = vadd.f32 1.0, %v751_v45 }
 0x1dc   : > { %v753_v47 = vpop.eup %752 }
 0x1dd   : > { %766 = vrcp.f32 %v461_v46  ;;  %v460_v48 = vadd.f32 1.0, %v753_v47 }
 0x1de   : > { %v755_v49 = vpop.eup %754 }
 0x1df   : > { %768 = vrcp.f32 %v460_v48  ;;  %v463_v50 = vadd.f32 1.0, %v755_v49 }
 0x1e0   : > { %v757_v51 = vpop.eup %756 }
 0x1e1   : > { %770 = vrcp.f32 %v463_v50  ;;  %v462_v52 = vadd.f32 1.0, %v757_v51 }
 0x1e2   : > { %v759_v53 = vpop.eup %758 }
 0x1e3   : > { %772 = vrcp.f32 %v462_v52  ;;  %481 = vst.msk [vmem:[%s205_s7 + $0x8] sm:$0xff] %vm223_vm1, %v759_v53 }
 0x1e4   : > { %v761_v54 = vpop.eup %760 }
 0x1e5   : > { %480 = vst.msk [vmem:[%s205_s7] sm:$0xff] %vm223_vm1, %v761_v54 }
 0x1e6   : > { %v763_v55 = vpop.eup %762 }
 0x1e7   : > { %483 = vst.msk [vmem:[%s205_s7 + $0x18] sm:$0xff] %vm223_vm1, %v763_v55 }
 0x1e8   : > { %v765_v56 = vpop.eup %764 }
 0x1e9   : > { %482 = vst.msk [vmem:[%s205_s7 + $0x10] sm:$0xff] %vm223_vm1, %v765_v56 }
 0x1ea   : > { %v767_v57 = vpop.eup %766 }
 0x1eb   : > { %485 = vst.msk [vmem:[%s205_s7 + $0x28] sm:$0xff] %vm223_vm1, %v767_v57 }
 0x1ec   : > { %v769_v58 = vpop.eup %768 }
 0x1ed   : > { %484 = vst.msk [vmem:[%s205_s7 + $0x20] sm:$0xff] %vm223_vm1, %v769_v58 }
 0x1ee   : > { %v771_v59 = vpop.eup %770 }
 0x1ef   : > { %487 = vst.msk [vmem:[%s205_s7 + $0x38] sm:$0xff] %vm223_vm1, %v771_v59 }
 0x1f0   : > { %v773_v60 = vpop.eup %772 }
 0x1f1   : > { %486 = vst.msk [vmem:[%s205_s7 + $0x30] sm:$0xff] %vm223_vm1, %v773_v60 }
 0x1f2   : > { %815 = shalt.err (!%p812_p6)
}
 0x1f3   : > { %s816_s23 = scalar_lea.hbm %s1054_s11, 1024  ;;  %s820_s24 = scalar_lea.hbm %s1109_s3, 2048 }
 0x1f4   : > { %p817_p7 = scmp.ne.s32.totalorder %s1054_s11, %s816_s23  ;;  %p821_p13 = scmp.lt.s32.totalorder %s1054_s11, %s1109_s3 }
 0x1f5   : > { %p822_p2 = scmp.lt.s32.totalorder %s820_s24, %s816_s23 }
 0x1f6   : > { %p818_p10 = pnand %p817_p7, %p963_p9 }
 0x1f7   : > { %p823_p8 = por %p822_p2, %p821_p13 }
 0x1f8   : > { %p819_p4 = pneg %p818_p10 }
 0x1fa   : > { %p824_p12 = pnand %p823_p8, %p819_p4 }
 0x1fc   : > { %827 = shalt.err (!%p824_p12)
}
 0x1fd   : > { %s890_s7 = smov 128   ;;  %s891_s8 = smov 8  }
 0x1fe   : > { %676 = dma.vmem_to_hbm [thread:$0]  (%p963_p9), %s1056_s9, 1024, %s1054_s11, %s489_s15, %s890_s7, %s890_s7, %s891_s8  }
 0x1ff PF: > { %s518_s29 = sand.u32 1, %s862_s12   ;;  %p1115_p0 = scmp.ge.s32.totalorder %s882_s17, 2 }
 0x200   : > { %s519_s10 = scalar_lea.sflag [#allocation4], %s518_s29 }
 0x201   : > { %p683_p1 = pnand %p1115_p0, %p970_p11 }
 0x203   : > { %p684_p3 = pneg %p683_p1 }
 0x205   : > { %857 = dma.done.wait (%p684_p3), %s519_s10, 1024  }
 0x206   : > { %859 = vsyncadd (%p684_p3), %s519_s10, 4294966272  ;;  %s19_s17 = sadd.s32 1, %s882_s17   ;;  %s1116_s12 = smov %s866_s13 }
 0x207   : > { %p16_p5 = scmp.ge.s32.totalorder %s19_s17, 4   ;;  %s1117_s13 = smov %s870_s14 }
 0x208   : > { %s1118_s14 = smov %s968_s26  ;;  %s1119_s15 = smov %s878_s16 }
 0x209   : > { %s1120_s16 = smov %s1122_s20  ;;  %18 = sbr.rel (!%p16_p5) target bundleno = 6 (0x6), region = 77 }
 0x20e   :  { %524 = vsyncpa [#allocation3], 1 }
 0x20f   :  { %526 = vsyncpa [#allocation3 + $0x1], 1 }
 0x210   :  { %527 = vsyncpa [#allocation4], 1 }
 0x211   :  { %529 = vsyncpa [#allocation4 + $0x1], 1 }

</bundles_post_ra>
